<compile_context>
chip_gen: v6e
topology: v6e:2x2x1
jax: 0.10.0
libtpu: 0.0.40
codegen_flags: <defaults>
</compile_context>

<pallas_src>
import functools

import jax
import jax.numpy as jnp
from jax.experimental import pallas as pl
from jax.experimental.pallas import tpu as pltpu


# --------------------------------------------------------------------------- #
# Kernel
# --------------------------------------------------------------------------- #
def _dino_loss_kernel(student_ref, teacher_ref, center_ref,
                      loss_ref, csum_ref,
                      *, n_s, n_t, student_temp, teacher_temp):
    bt = pl.program_id(1)                     # batch-tile index (reduction axis)

    @pl.when(bt == 0)
    def _():
        loss_ref[...] = jnp.zeros_like(loss_ref)
        csum_ref[...] = jnp.zeros_like(csum_ref)

    tb = student_ref.shape[1]
    d = student_ref.shape[2]
    c = center_ref[...].astype(jnp.float32)                       # (1, D)
    inv_st = 1.0 / student_temp
    inv_tt = 1.0 / teacher_temp

    # ---- student log-softmax: one pass per view, computed exactly once.
    #      Keep only the first min(n_s, n_t) views (their diagonal pair is
    #      skipped); everything else only contributes to the running sum. ----
    s_sum = None
    kept = []
    for j in range(n_s):
        sj = student_ref[j].astype(jnp.float32) * inv_st          # (TB, D)
        sj = sj - jnp.max(sj, axis=-1, keepdims=True)
        lsj = sj - jnp.log(jnp.sum(jnp.exp(sj), axis=-1, keepdims=True))
        s_sum = lsj if s_sum is None else s_sum + lsj
        if j < n_t:
            kept.append(lsj)

    # ---- teacher views, one at a time (no (n_t, TB, D) exp materialized) ----
    ones_row = jnp.ones((1, tb), jnp.float32)                     # MXU row-sum
    row_loss = jnp.zeros((tb, 1), jnp.float32)
    csum = jnp.zeros((1, d), jnp.float32)
    # TODO(synk): if n_t grows beyond ~4, switch this to a lax.fori_loop
    # (unroll=True) over ref slices to bound live ranges.
    for i in range(n_t):
        ti = teacher_ref[i].astype(jnp.float32)                   # (TB, D)
        # Teacher batch-center partial sum on the otherwise idle MXU.
        csum = csum + jnp.dot(ones_row, ti,
                              preferred_element_type=jnp.float32)  # (1, D)
        tl = (ti - c) * inv_tt
        tl = tl - jnp.max(tl, axis=-1, keepdims=True)
        te = jnp.exp(tl)                                          # un-normalized
        z = jnp.sum(te, axis=-1, keepdims=True)                   # (TB, 1)
        # Linearized pairwise CE: sum_{j != i} -t_i . log_softmax(s_j)
        #   = -t_i . (S_sum - [i < n_s] * log_softmax(s_i))
        target = s_sum - kept[i] if i < n_s else s_sum
        ce = jnp.sum(te * target, axis=-1, keepdims=True)         # (TB, 1)
        row_loss = row_loss - ce * pl.reciprocal(z, approx=True)

    loss_ref[...] += jnp.sum(row_loss, axis=0, keepdims=True)     # (1, 1)
    csum_ref[...] += csum                                         # (1, D)


# --------------------------------------------------------------------------- #
# Sizing heuristics (generation-aware)
# --------------------------------------------------------------------------- #
def _vmem_capacity_bytes():
    try:
        return int(pltpu.get_tpu_info().vmem_capacity_bytes)
    except Exception:
        return 64 * 1024 * 1024        # conservative (v7x-sized) fallback


def _per_row_bytes(n_s, n_t, d, in_itemsize):
    # Double-buffered input blocks + live f32 intermediates
    # (s_sum, kept log-softmaxes, per-view f32 copy / exp / target temps).
    io = 2 * (n_s + n_t) * d * in_itemsize
    f32 = (min(n_s, n_t) + 5) * d * 4
    return io + f32


def _choose_batch_tile(b, per_row, budget):
    if b % 8 != 0 or b * per_row <= budget:
        return b                                   # single full-batch tile
    best = 8
    for t in range(8, b, 8):
        if b % t == 0 and t * per_row <= budget:
            best = t                               # largest fitting divisor
    return best


def _vmem_limit_bytes(need, capacity):
    hard_cap = int(0.75 * capacity)                # ~48 MiB v7x, ~96 MiB v5e/v6e
    return int(min(max(2 * need, 16 * 1024 * 1024), hard_cap))


# --------------------------------------------------------------------------- #
# Wrapper
# --------------------------------------------------------------------------- #
def dino_loss(student_stack, teacher_stack, center, *,
              student_temp, teacher_temp, center_momentum,
              input_dtype=jnp.bfloat16, force_batch_tile=None):
    """Returns (total_loss scalar, new_center [1, D])."""
    n_s, b, d = student_stack.shape
    n_t, b2, d2 = teacher_stack.shape
    assert (b, d) == (b2, d2)
    n_loss_terms = max(n_t * n_s - min(n_t, n_s), 1)

    if input_dtype is not None:
        student_stack = student_stack.astype(input_dtype)
        teacher_stack = teacher_stack.astype(input_dtype)
    center_f32 = center.astype(jnp.float32)
    in_itemsize = jnp.dtype(student_stack.dtype).itemsize

    cap = _vmem_capacity_bytes()
    per_row = _per_row_bytes(n_s, n_t, d, in_itemsize)
    tb = force_batch_tile or _choose_batch_tile(b, per_row, int(0.55 * cap))
    assert b % tb == 0, (b, tb)
    n_tiles = b // tb
    n_par = 2 if (n_tiles >= 2 and n_tiles % 2 == 0) else 1   # v7x: 2 TCs
    n_bt = n_tiles // n_par

    # TODO(synk): for very large out_dim (e.g. the 65536-wide DINO head) add a
    # D-tiled grid axis with an online/two-pass softmax so a row block fits
    # v7x's 64 MiB VMEM; current kernel assumes full rows fit one tile.

    kernel = functools.partial(
        _dino_loss_kernel, n_s=n_s, n_t=n_t,
        student_temp=float(student_temp), teacher_temp=float(teacher_temp))

    need = tb * per_row + 4 * d * 4 + (1 << 16)
    flops = b * d * (5 * n_s + 7 * n_t)
    transcendentals = (n_s + n_t) * b * d + (n_s + n_t) * b
    bytes_accessed = ((n_s + n_t) * b * d * in_itemsize
                      + d * 4 + n_par * (d + 1) * 4)

    loss_part, csum_part = pl.pallas_call(
        kernel,
        out_shape=(
            jax.ShapeDtypeStruct((n_par, 1, 1), jnp.float32),   # partial loss sums
            jax.ShapeDtypeStruct((n_par, 1, d), jnp.float32),   # partial teacher sums
        ),
        grid_spec=pltpu.PrefetchScalarGridSpec(
            num_scalar_prefetch=0,
            grid=(n_par, n_bt),
            in_specs=[
                pl.BlockSpec((n_s, tb, d), lambda p, t: (0, p * n_bt + t, 0)),
                pl.BlockSpec((n_t, tb, d), lambda p, t: (0, p * n_bt + t, 0)),
                pl.BlockSpec((1, d), lambda p, t: (0, 0)),
            ],
            out_specs=[
                pl.BlockSpec((pl.Squeezed(), 1, 1), lambda p, t: (p, 0, 0)),
                pl.BlockSpec((pl.Squeezed(), 1, d), lambda p, t: (p, 0, 0)),
            ]),
        compiler_params=pltpu.CompilerParams(
            dimension_semantics=("parallel", "arbitrary"),
            vmem_limit_bytes=_vmem_limit_bytes(need, cap)),
        cost_estimate=pl.CostEstimate(
            flops=int(flops), transcendentals=int(transcendentals),
            bytes_accessed=int(bytes_accessed)),
    )(student_stack, teacher_stack, center_f32)

    loss = jnp.sum(loss_part) * (1.0 / (b * n_loss_terms))
    batch_center = jnp.sum(csum_part, axis=0) * (1.0 / (n_t * b))   # (1, D)
    new_center = (center_f32 * center_momentum
                  + (1.0 - center_momentum) * batch_center)
    return loss, new_center


# --------------------------------------------------------------------------- #
# Pure-JAX reference (mirrors the PyTorch module)
# --------------------------------------------------------------------------- #
def _reference(student_stack, teacher_stack, center, *,
               student_temp, teacher_temp, center_momentum):
    s_out = [jax.nn.log_softmax(student_stack[i] / student_temp, axis=-1)
             for i in range(student_stack.shape[0])]
    t_out = [jax.nn.softmax((teacher_stack[i] - center) / teacher_temp, axis=-1)
             for i in range(teacher_stack.shape[0])]
    total, n = 0.0, 0
    for ti, t in enumerate(t_out):
        for si, s in enumerate(s_out):
            if ti == si:
                continue
            total += jnp.mean(jnp.sum(-t * s, axis=-1))
            n += 1
    total = total / n
    batch_center = jnp.mean(teacher_stack.reshape(-1, teacher_stack.shape[-1]),
                            axis=0, keepdims=True)
    new_center = center * center_momentum + (1 - center_momentum) * batch_center
    return total, new_center


if __name__ == "__main__":
    out_dim = 128
    teacher_temp, student_temp, center_momentum = 0.04, 0.1, 0.9
    B, n_student_views, n_teacher_views = 8, 3, 2

    key = jax.random.PRNGKey(0)
    ks, kt = jax.random.split(key)
    student_stack = jax.random.normal(ks, (n_student_views, B, out_dim), jnp.float32)
    teacher_stack = jax.random.normal(kt, (n_teacher_views, B, out_dim), jnp.float32)
    center = jnp.zeros((1, out_dim), jnp.float32)   # register_buffer init

    loss, new_center = dino_loss(
        student_stack, teacher_stack, center,
        student_temp=student_temp, teacher_temp=teacher_temp,
        center_momentum=center_momentum)
    jax.block_until_ready((loss, new_center))

    # Reference on the same bf16-quantized inputs the kernel DMAs.
    s_q = student_stack.astype(jnp.bfloat16).astype(jnp.float32)
    t_q = teacher_stack.astype(jnp.bfloat16).astype(jnp.float32)
    ref_loss, ref_center = _reference(
        s_q, t_q, center, student_temp=student_temp,
        teacher_temp=teacher_temp, center_momentum=center_momentum)
    assert jnp.allclose(loss, ref_loss, rtol=5e-3, atol=1e-4), (loss, ref_loss)
    assert jnp.allclose(new_center, ref_center, rtol=1e-3, atol=1e-5)

    # Exercise the multi-tile + dual-core ("parallel") path with a forced tile.
    B2 = 32
    s2 = jax.random.normal(jax.random.PRNGKey(1), (n_student_views, B2, out_dim),
                           jnp.float32)
    t2 = jax.random.normal(jax.random.PRNGKey(2), (n_teacher_views, B2, out_dim),
                           jnp.float32)
    loss2, center2 = dino_loss(
        s2, t2, center, student_temp=student_temp, teacher_temp=teacher_temp,
        center_momentum=center_momentum, force_batch_tile=8)
    jax.block_until_ready((loss2, center2))
    ref_loss2, ref_center2 = _reference(
        s2.astype(jnp.bfloat16).astype(jnp.float32),
        t2.astype(jnp.bfloat16).astype(jnp.float32), center,
        student_temp=student_temp, teacher_temp=teacher_temp,
        center_momentum=center_momentum)
    assert jnp.allclose(loss2, ref_loss2, rtol=5e-3, atol=1e-4), (loss2, ref_loss2)
    assert jnp.allclose(center2, ref_center2, rtol=1e-3, atol=1e-5)

    print("KERNEL_OK")
</pallas_src>

<mosaic_0001>
module attributes {stable_mosaic.version = 11 : i64} {
  func.func @_dino_loss_kernel(%arg0: i32, %arg1: i32, %arg2: memref<3x8x128xbf16, #tpu.memory_space<vmem>>, %arg3: memref<2x8x128xbf16, #tpu.memory_space<vmem>>, %arg4: memref<1x128xf32, #tpu.memory_space<vmem>>, %arg5: memref<1x1x1xf32, #tpu.memory_space<vmem>>, %arg6: memref<1x1x128xf32, #tpu.memory_space<vmem>>) attributes {dimension_semantics = [#tpu.dimension_semantics<parallel>, #tpu.dimension_semantics<arbitrary>], iteration_bounds = array<i64: 1, 1>, scalar_prefetch = 0 : i64, scratch_operands = 0 : i64, tpu.core_type = #tpu.core_type<tc>, window_params = [{transform_indices = @transform_0, window_bounds = array<i64: 3, 8, 128>}, {transform_indices = @transform_1, window_bounds = array<i64: 2, 8, 128>}, {pipeline_mode = #tpu.pipeline_mode<synchronous>, transform_indices = @transform_2, window_bounds = array<i64: 1, 128>}, {transform_indices = @transform_3, window_bounds = array<i64: 1, 1, 1>}, {transform_indices = @transform_4, window_bounds = array<i64: 1, 1, 128>}]} {
    %c0_i32 = arith.constant 0 : i32
    %0 = arith.cmpi eq, %arg1, %c0_i32 : i32
    %1 = arith.extui %0 : i1 to i32
    %c0_i32_0 = arith.constant 0 : i32
    %2 = arith.cmpi ne, %1, %c0_i32_0 : i32
    scf.if %2 {
      %cst_49 = arith.constant 0.000000e+00 : f32
      %114 = vector.broadcast %cst_49 : f32 to vector<1x1xf32>
      %c0_50 = arith.constant 0 : index
      %c0_51 = arith.constant 0 : index
      %c0_52 = arith.constant 0 : index
      %115 = vector.load %arg5[%c0_50, %c0_51, %c0_52] : memref<1x1x1xf32, #tpu.memory_space<vmem>>, vector<1x1x1xf32>
      %116 = vector.shape_cast %115 : vector<1x1x1xf32> to vector<1x1xf32>
      %117 = vector.shape_cast %114 : vector<1x1xf32> to vector<1x1x1xf32>
      tpu.vector_store %arg5[%c0_50, %c0_51, %c0_52], %117 {strides = array<i32>} : memref<1x1x1xf32, #tpu.memory_space<vmem>>, vector<1x1x1xf32>,
      %cst_53 = arith.constant 0.000000e+00 : f32
      %118 = vector.broadcast %cst_53 : f32 to vector<1x128xf32>
      %c0_54 = arith.constant 0 : index
      %c0_55 = arith.constant 0 : index
      %c0_56 = arith.constant 0 : index
      %119 = vector.load %arg6[%c0_54, %c0_55, %c0_56] : memref<1x1x128xf32, #tpu.memory_space<vmem>>, vector<1x1x128xf32>
      %120 = vector.shape_cast %119 : vector<1x1x128xf32> to vector<1x128xf32>
      %121 = vector.shape_cast %118 : vector<1x128xf32> to vector<1x1x128xf32>
      tpu.vector_store %arg6[%c0_54, %c0_55, %c0_56], %121 {strides = array<i32>} : memref<1x1x128xf32, #tpu.memory_space<vmem>>, vector<1x1x128xf32>,
    } else {
    }
    %c0 = arith.constant 0 : index
    %c0_1 = arith.constant 0 : index
    %3 = vector.load %arg4[%c0, %c0_1] : memref<1x128xf32, #tpu.memory_space<vmem>>, vector<1x128xf32>
    %c0_2 = arith.constant 0 : index
    %c0_3 = arith.constant 0 : index
    %c0_4 = arith.constant 0 : index
    %4 = vector.load %arg2[%c0_2, %c0_3, %c0_4] : memref<3x8x128xbf16, #tpu.memory_space<vmem>>, vector<1x8x128xbf16>
    %5 = vector.shape_cast %4 : vector<1x8x128xbf16> to vector<8x128xbf16>
    %6 = arith.extf %5 : vector<8x128xbf16> to vector<8x128xf32>
    %cst = arith.constant 1.000000e+01 : f32
    %7 = vector.broadcast %cst : f32 to vector<8x128xf32>
    %8 = arith.mulf %6, %7 : vector<8x128xf32>
    %cst_5 = arith.constant dense<0xFF800000> : vector<8xf32>
    %9 = vector.multi_reduction <maximumf>, %8, %cst_5 [1] : vector<8x128xf32> to vector<8xf32>
    %10 = vector.shape_cast %9 : vector<8xf32> to vector<8x1xf32>
    %11 = vector.broadcast %10 : vector<8x1xf32> to vector<8x128xf32>
    %12 = arith.subf %8, %11 : vector<8x128xf32>
    %13 = math.exp %12 : vector<8x128xf32>
    %cst_6 = arith.constant dense<0.000000e+00> : vector<8xf32>
    %14 = vector.multi_reduction <add>, %13, %cst_6 [1] : vector<8x128xf32> to vector<8xf32>
    %15 = vector.shape_cast %14 : vector<8xf32> to vector<8x1xf32>
    %16 = math.log %15 : vector<8x1xf32>
    %17 = vector.broadcast %16 : vector<8x1xf32> to vector<8x128xf32>
    %18 = arith.subf %12, %17 : vector<8x128xf32>
    %c1 = arith.constant 1 : index
    %c0_7 = arith.constant 0 : index
    %c0_8 = arith.constant 0 : index
    %19 = vector.load %arg2[%c1, %c0_7, %c0_8] : memref<3x8x128xbf16, #tpu.memory_space<vmem>>, vector<1x8x128xbf16>
    %20 = vector.shape_cast %19 : vector<1x8x128xbf16> to vector<8x128xbf16>
    %21 = arith.extf %20 : vector<8x128xbf16> to vector<8x128xf32>
    %cst_9 = arith.constant 1.000000e+01 : f32
    %22 = vector.broadcast %cst_9 : f32 to vector<8x128xf32>
    %23 = arith.mulf %21, %22 : vector<8x128xf32>
    %cst_10 = arith.constant dense<0xFF800000> : vector<8xf32>
    %24 = vector.multi_reduction <maximumf>, %23, %cst_10 [1] : vector<8x128xf32> to vector<8xf32>
    %25 = vector.shape_cast %24 : vector<8xf32> to vector<8x1xf32>
    %26 = vector.broadcast %25 : vector<8x1xf32> to vector<8x128xf32>
    %27 = arith.subf %23, %26 : vector<8x128xf32>
    %28 = math.exp %27 : vector<8x128xf32>
    %cst_11 = arith.constant dense<0.000000e+00> : vector<8xf32>
    %29 = vector.multi_reduction <add>, %28, %cst_11 [1] : vector<8x128xf32> to vector<8xf32>
    %30 = vector.shape_cast %29 : vector<8xf32> to vector<8x1xf32>
    %31 = math.log %30 : vector<8x1xf32>
    %32 = vector.broadcast %31 : vector<8x1xf32> to vector<8x128xf32>
    %33 = arith.subf %27, %32 : vector<8x128xf32>
    %34 = arith.addf %18, %33 : vector<8x128xf32>
    %c2 = arith.constant 2 : index
    %c0_12 = arith.constant 0 : index
    %c0_13 = arith.constant 0 : index
    %35 = vector.load %arg2[%c2, %c0_12, %c0_13] : memref<3x8x128xbf16, #tpu.memory_space<vmem>>, vector<1x8x128xbf16>
    %36 = vector.shape_cast %35 : vector<1x8x128xbf16> to vector<8x128xbf16>
    %37 = arith.extf %36 : vector<8x128xbf16> to vector<8x128xf32>
    %cst_14 = arith.constant 1.000000e+01 : f32
    %38 = vector.broadcast %cst_14 : f32 to vector<8x128xf32>
    %39 = arith.mulf %37, %38 : vector<8x128xf32>
    %cst_15 = arith.constant dense<0xFF800000> : vector<8xf32>
    %40 = vector.multi_reduction <maximumf>, %39, %cst_15 [1] : vector<8x128xf32> to vector<8xf32>
    %41 = vector.shape_cast %40 : vector<8xf32> to vector<8x1xf32>
    %42 = vector.broadcast %41 : vector<8x1xf32> to vector<8x128xf32>
    %43 = arith.subf %39, %42 : vector<8x128xf32>
    %44 = math.exp %43 : vector<8x128xf32>
    %cst_16 = arith.constant dense<0.000000e+00> : vector<8xf32>
    %45 = vector.multi_reduction <add>, %44, %cst_16 [1] : vector<8x128xf32> to vector<8xf32>
    %46 = vector.shape_cast %45 : vector<8xf32> to vector<8x1xf32>
    %47 = math.log %46 : vector<8x1xf32>
    %48 = vector.broadcast %47 : vector<8x1xf32> to vector<8x128xf32>
    %49 = arith.subf %43, %48 : vector<8x128xf32>
    %50 = arith.addf %34, %49 : vector<8x128xf32>
    %cst_17 = arith.constant 1.000000e+00 : f32
    %51 = vector.broadcast %cst_17 : f32 to vector<1x8xf32>
    %cst_18 = arith.constant 0.000000e+00 : f32
    %52 = vector.broadcast %cst_18 : f32 to vector<8x1xf32>
    %cst_19 = arith.constant 0.000000e+00 : f32
    %53 = vector.broadcast %cst_19 : f32 to vector<1x128xf32>
    %c0_20 = arith.constant 0 : index
    %c0_21 = arith.constant 0 : index
    %c0_22 = arith.constant 0 : index
    %54 = vector.load %arg3[%c0_20, %c0_21, %c0_22] : memref<2x8x128xbf16, #tpu.memory_space<vmem>>, vector<1x8x128xbf16>
    %55 = vector.shape_cast %54 : vector<1x8x128xbf16> to vector<8x128xbf16>
    %56 = arith.extf %55 : vector<8x128xbf16> to vector<8x128xf32>
    %cst_23 = arith.constant dense<0.000000e+00> : vector<1x128xf32>
    %57 = tpu.matmul %51, %56, %cst_23 {dimension_numbers = #tpu.dot_dimension_numbers<[1], [0], [0], [1], [0, 0, 1, 1], [], []>} : vector<1x8xf32>, vector<8x128xf32>, vector<1x128xf32> -> vector<1x128xf32>
    %58 = arith.addf %53, %57 : vector<1x128xf32>
    %59 = vector.broadcast %3 : vector<1x128xf32> to vector<8x128xf32>
    %60 = arith.subf %56, %59 : vector<8x128xf32>
    %cst_24 = arith.constant 2.500000e+01 : f32
    %61 = vector.broadcast %cst_24 : f32 to vector<8x128xf32>
    %62 = arith.mulf %60, %61 : vector<8x128xf32>
    %cst_25 = arith.constant dense<0xFF800000> : vector<8xf32>
    %63 = vector.multi_reduction <maximumf>, %62, %cst_25 [1] : vector<8x128xf32> to vector<8xf32>
    %64 = vector.shape_cast %63 : vector<8xf32> to vector<8x1xf32>
    %65 = vector.broadcast %64 : vector<8x1xf32> to vector<8x128xf32>
    %66 = arith.subf %62, %65 : vector<8x128xf32>
    %67 = math.exp %66 : vector<8x128xf32>
    %cst_26 = arith.constant dense<0.000000e+00> : vector<8xf32>
    %68 = vector.multi_reduction <add>, %67, %cst_26 [1] : vector<8x128xf32> to vector<8xf32>
    %69 = vector.shape_cast %68 : vector<8xf32> to vector<8x1xf32>
    %70 = arith.subf %50, %18 : vector<8x128xf32>
    %71 = arith.mulf %67, %70 : vector<8x128xf32>
    %cst_27 = arith.constant dense<0.000000e+00> : vector<8xf32>
    %72 = vector.multi_reduction <add>, %71, %cst_27 [1] : vector<8x128xf32> to vector<8xf32>
    %73 = vector.shape_cast %72 : vector<8xf32> to vector<8x1xf32>
    %74 = tpu.reciprocal %69 {approx = true} : vector<8x1xf32> -> vector<8x1xf32>
    %75 = arith.mulf %73, %74 : vector<8x1xf32>
    %76 = arith.subf %52, %75 : vector<8x1xf32>
    %c1_28 = arith.constant 1 : index
    %c0_29 = arith.constant 0 : index
    %c0_30 = arith.constant 0 : index
    %77 = vector.load %arg3[%c1_28, %c0_29, %c0_30] : memref<2x8x128xbf16, #tpu.memory_space<vmem>>, vector<1x8x128xbf16>
    %78 = vector.shape_cast %77 : vector<1x8x128xbf16> to vector<8x128xbf16>
    %79 = arith.extf %78 : vector<8x128xbf16> to vector<8x128xf32>
    %cst_31 = arith.constant dense<0.000000e+00> : vector<1x128xf32>
    %80 = tpu.matmul %51, %79, %cst_31 {dimension_numbers = #tpu.dot_dimension_numbers<[1], [0], [0], [1], [0, 0, 1, 1], [], []>} : vector<1x8xf32>, vector<8x128xf32>, vector<1x128xf32> -> vector<1x128xf32>
    %81 = arith.addf %58, %80 : vector<1x128xf32>
    %82 = vector.broadcast %3 : vector<1x128xf32> to vector<8x128xf32>
    %83 = arith.subf %79, %82 : vector<8x128xf32>
    %cst_32 = arith.constant 2.500000e+01 : f32
    %84 = vector.broadcast %cst_32 : f32 to vector<8x128xf32>
    %85 = arith.mulf %83, %84 : vector<8x128xf32>
    %cst_33 = arith.constant dense<0xFF800000> : vector<8xf32>
    %86 = vector.multi_reduction <maximumf>, %85, %cst_33 [1] : vector<8x128xf32> to vector<8xf32>
    %87 = vector.shape_cast %86 : vector<8xf32> to vector<8x1xf32>
    %88 = vector.broadcast %87 : vector<8x1xf32> to vector<8x128xf32>
    %89 = arith.subf %85, %88 : vector<8x128xf32>
    %90 = math.exp %89 : vector<8x128xf32>
    %cst_34 = arith.constant dense<0.000000e+00> : vector<8xf32>
    %91 = vector.multi_reduction <add>, %90, %cst_34 [1] : vector<8x128xf32> to vector<8xf32>
    %92 = vector.shape_cast %91 : vector<8xf32> to vector<8x1xf32>
    %93 = arith.subf %50, %33 : vector<8x128xf32>
    %94 = arith.mulf %90, %93 : vector<8x128xf32>
    %cst_35 = arith.constant dense<0.000000e+00> : vector<8xf32>
    %95 = vector.multi_reduction <add>, %94, %cst_35 [1] : vector<8x128xf32> to vector<8xf32>
    %96 = vector.shape_cast %95 : vector<8xf32> to vector<8x1xf32>
    %97 = tpu.reciprocal %92 {approx = true} : vector<8x1xf32> -> vector<8x1xf32>
    %98 = arith.mulf %96, %97 : vector<8x1xf32>
    %99 = arith.subf %76, %98 : vector<8x1xf32>
    %c0_36 = arith.constant 0 : index
    %c0_37 = arith.constant 0 : index
    %c0_38 = arith.constant 0 : index
    %100 = vector.load %arg5[%c0_36, %c0_37, %c0_38] : memref<1x1x1xf32, #tpu.memory_space<vmem>>, vector<1x1x1xf32>
    %101 = vector.shape_cast %100 : vector<1x1x1xf32> to vector<1x1xf32>
    %cst_39 = arith.constant dense<0.000000e+00> : vector<1xf32>
    %102 = vector.multi_reduction <add>, %99, %cst_39 [0] : vector<8x1xf32> to vector<1xf32>
    %103 = vector.shape_cast %102 : vector<1xf32> to vector<1x1xf32>
    %104 = arith.addf %101, %103 : vector<1x1xf32>
    %c0_40 = arith.constant 0 : index
    %c0_41 = arith.constant 0 : index
    %c0_42 = arith.constant 0 : index
    %105 = vector.load %arg5[%c0_40, %c0_41, %c0_42] : memref<1x1x1xf32, #tpu.memory_space<vmem>>, vector<1x1x1xf32>
    %106 = vector.shape_cast %105 : vector<1x1x1xf32> to vector<1x1xf32>
    %107 = vector.shape_cast %104 : vector<1x1xf32> to vector<1x1x1xf32>
    tpu.vector_store %arg5[%c0_40, %c0_41, %c0_42], %107 {strides = array<i32>} : memref<1x1x1xf32, #tpu.memory_space<vmem>>, vector<1x1x1xf32>,
    %c0_43 = arith.constant 0 : index
    %c0_44 = arith.constant 0 : index
    %c0_45 = arith.constant 0 : index
    %108 = vector.load %arg6[%c0_43, %c0_44, %c0_45] : memref<1x1x128xf32, #tpu.memory_space<vmem>>, vector<1x1x128xf32>
    %109 = vector.shape_cast %108 : vector<1x1x128xf32> to vector<1x128xf32>
    %110 = arith.addf %109, %81 : vector<1x128xf32>
    %c0_46 = arith.constant 0 : index
    %c0_47 = arith.constant 0 : index
    %c0_48 = arith.constant 0 : index
    %111 = vector.load %arg6[%c0_46, %c0_47, %c0_48] : memref<1x1x128xf32, #tpu.memory_space<vmem>>, vector<1x1x128xf32>
    %112 = vector.shape_cast %111 : vector<1x1x128xf32> to vector<1x128xf32>
    %113 = vector.shape_cast %110 : vector<1x128xf32> to vector<1x1x128xf32>
    tpu.vector_store %arg6[%c0_46, %c0_47, %c0_48], %113 {strides = array<i32>} : memref<1x1x128xf32, #tpu.memory_space<vmem>>, vector<1x1x128xf32>,
    return
  }
  func.func @transform_0(%arg0: i32, %arg1: i32) -> (i32, i32, i32) {
    %c1_i32 = arith.constant 1 : i32
    %0 = arith.muli %arg0, %c1_i32 : i32
    %1 = arith.addi %0, %arg1 : i32
    %c0_i32 = arith.constant 0 : i32
    %c0_i32_0 = arith.constant 0 : i32
    %c0_i32_1 = arith.constant 0 : i32
    return %c0_i32, %1, %c0_i32_0 : i32, i32, i32
  }
  func.func @transform_1(%arg0: i32, %arg1: i32) -> (i32, i32, i32) {
    %c1_i32 = arith.constant 1 : i32
    %0 = arith.muli %arg0, %c1_i32 : i32
    %1 = arith.addi %0, %arg1 : i32
    %c0_i32 = arith.constant 0 : i32
    %c0_i32_0 = arith.constant 0 : i32
    %c0_i32_1 = arith.constant 0 : i32
    return %c0_i32, %1, %c0_i32_0 : i32, i32, i32
  }
  func.func @transform_2(%arg0: i32, %arg1: i32) -> (i32, i32) {
    %c0_i32 = arith.constant 0 : i32
    %c0_i32_0 = arith.constant 0 : i32
    %c0_i32_1 = arith.constant 0 : i32
    return %c0_i32, %c0_i32_0 : i32, i32
  }
  func.func @transform_3(%arg0: i32, %arg1: i32) -> (i32, i32, i32) {
    %c0_i32 = arith.constant 0 : i32
    %c0_i32_0 = arith.constant 0 : i32
    %c0_i32_1 = arith.constant 0 : i32
    return %arg0, %c0_i32, %c0_i32_0 : i32, i32, i32
  }
  func.func @transform_4(%arg0: i32, %arg1: i32) -> (i32, i32, i32) {
    %c0_i32 = arith.constant 0 : i32
    %c0_i32_0 = arith.constant 0 : i32
    %c0_i32_1 = arith.constant 0 : i32
    return %arg0, %c0_i32, %c0_i32_0 : i32, i32, i32
  }
}

</mosaic_0001>

<bundles_post_ra>
// kernel: tpu_custom_call.1
= control target key start
LH: loop header
LB: loop body
LE: loop exit
PB: predicated region body
PF: predicated region fallthrough
CT: control target
= control target key end

     0   :  { %10 = vsyncpa [#allocation3], 0  ;;  %s526_s0 = inlined_call_operand.hbm [shape: bf16[3,8,128], index: 0, kind: input, shape index: {}]   ;;  %s527_s1 = inlined_call_operand.hbm [shape: bf16[2,8,128], index: 1, kind: input, shape index: {}]   ;;  %s528_s2 = inlined_call_operand.vmem [shape: f32[1,128], index: 2, kind: input, shape index: {}]   ;;  %s529_s3 = inlined_call_operand.hbm [shape: f32[1,1,1], index: 3, kind: output, shape index: {0}]   ;;  %s530_s4 = inlined_call_operand.hbm [shape: f32[1,1,128], index: 4, kind: output, shape index: {1}]  }
   0x1   :  { %11 = vsyncpa [#allocation6], 0 }
   0x2   :  { %12 = vsyncpa [#allocation4], 0 }
   0x3   :  { %13 = vsyncpa [#allocation9], 0  ;;  %s469_s15 = smov [#allocation2]  }
   0x4   :  { %s22_s16 = sshll.u32 %s469_s15, 4  ;;  %s23_s16 = int_to_ptr.vmem [resolvable:$true] %s22_s16 }
   0x5   :  { %s389_s17 = scalar_lea.vmem %s23_s16, 192  ;;  %p394_p1 = scmp.lt.s32.totalorder %s23_s16, %s23_s16 }
   0x6   :  { %p390_p0 = scmp.ne.s32.totalorder %s23_s16, %s389_s17  ;;  %p395_p2 = scmp.lt.s32.totalorder %s389_s17, %s389_s17 }
   0x8   :  { %p396_p3 = por %p395_p2, %p394_p1 }
   0xa   :  { %p397_p4 = pnand %p396_p3, %p390_p0 }
   0xc   :  { %400 = shalt.err (!%p397_p4)
}
   0xd   :  { %s470_s18 = smov 64   ;;  %s471_s19 = smov 4  }
   0xe   :  { %28 = dma.hbm_to_vmem [thread:$0]  %s526_s0, 192, %s23_s16, [#allocation3], %s470_s18, %s470_s18, %s471_s19  }
   0xf   :  { %s472_s22 = smov [#allocation5]  }
  0x10   :  { %s37_s23 = sshll.u32 %s472_s22, 4  ;;  %s38_s23 = int_to_ptr.vmem [resolvable:$true] %s37_s23 }
  0x11   :  { %s409_s24 = scalar_lea.vmem %s38_s23, 128  ;;  %p414_p6 = scmp.lt.s32.totalorder %s38_s23, %s38_s23 }
  0x12   :  { %p410_p5 = scmp.ne.s32.totalorder %s38_s23, %s409_s24  ;;  %p415_p7 = scmp.lt.s32.totalorder %s409_s24, %s409_s24 }
  0x14   :  { %p416_p8 = por %p415_p7, %p414_p6 }
  0x16   :  { %p417_p9 = pnand %p416_p8, %p410_p5 }
  0x18   :  { %420 = shalt.err (!%p417_p9)
}
  0x19   :  { %43 = dma.hbm_to_vmem [thread:$0]  %s527_s1, 128, %s38_s23, [#allocation6], %s470_s18, %s470_s18, %s471_s19  }
  0x1a   :  { %461 = dma.done.wait [#allocation3], 192  }
  0x1b   :  { %462 = vsyncadd [#allocation3], 4294967104 }
  0x1c   :  { %463 = dma.done.wait [#allocation6], 128  }
  0x1d   :  { %464 = vsyncadd [#allocation6], 4294967168  ;;  %v62_v0 = vld [vmem:[#allocation2] sm:$0xff]   ;;  %v91_v1 = vld [vmem:[#allocation2 + $0x8] sm:$0xf]  ;;  %v473_v16 = vmov 0.0  }
  0x1e   :  { %v63_v2 = vunpack.c.l.bf16 %v62_v0  ;;  %v92_v3 = vunpack.c.l.bf16 %v91_v1  ;;  %v77_v4 = vunpack.c.h.bf16 %v62_v0  ;;  %v105_v8 = vld [vmem:[#allocation5] sm:$0xff]   ;;  %v335_v9 = vld [vmem:[%s528_s2] ss:$0 sm:$0xff]  ;;  %342 = vmatprep.subr.mxu0 %v473_v16  ;;  %60 = vst [vmem:[#allocation8] sm:$0x1] %v473_v16  ;;  %347 = vmatprep.subr.mxu1 %v473_v16  ;;  %vm132_vm0 = vcmask 64512  }
  0x1f   :  { %v106_v10 = vunpack.c.l.bf16 %v105_v8  ;;  %v131_v11 = vunpack.c.h.bf16 %v105_v8  ;;  %vm474_vm1 = vmmov 0   ;;  %v475_v17 = vmov 1.0   ;;  %s476_s1 = smov [#allocation8]  }
  0x20   :  { %v64_v5 = vmul.f32 10.0, %v63_v2  ;;  %v93_v6 = vmul.f32 10.0, %v92_v3  ;;  %v78_v7 = vmul.f32 10.0, %v77_v4  ;;  %344 = vmatprep.mubr.msk.f32.mxu0 %vm474_vm1, %v473_v16  ;;  %349 = vmatprep.mubr.msk.f32.mxu1 %vm474_vm1, %v473_v16  ;;  %vm58_vm2 = vcmask 0   ;;  %s321_s2 = sshll.u32 %s476_s1, 4  ;;  %s322_s2 = int_to_ptr.vmem [resolvable:$true] %s321_s2 }
  0x21   :  { %v113_v12 = vsub.f32 %v106_v10, %v335_v9  ;;  %v276_v13 = vsub.f32 %v131_v11, %v335_v9  ;;  %343 = vmatpush3.msra.mxu0 %v131_v11  ;;  %348 = vmatpush3.msra.mxu1 %v106_v10  ;;  %59 = vst.msk [vmem:[#allocation7] sm:$0x1] %vm58_vm2, %v473_v16  ;;  %s421_s28 = scalar_lea.vmem %s322_s2, 16  ;;  %s425_s29 = scalar_lea.vmem %s322_s2, 32 }
  0x22   :  { %65 = vmax.xlane.f32.xlu0 %v64_v5  ;;  %94 = vmax.xlane.f32.xlu1 %v93_v6  ;;  %p422_p10 = scmp.ne.s32.totalorder %s322_s2, %s421_s28  ;;  %p426_p11 = scmp.lt.s32.totalorder %s322_s2, %s322_s2 }
  0x23   :  { %v114_v14 = vmul.f32 25.0, %v113_v12  ;;  %v277_v15 = vmul.f32 25.0, %v276_v13  ;;  %345 = vmatmul.mubr.msk.f32.vlgmr.msra.gmra.mxu0 %vm132_vm0, %v475_v17  ;;  %350 = vmatmul.mubr.msk.f32.vlgmr.msra.gmra.mxu1 %vm132_vm0, %v475_v17  ;;  %p427_p12 = scmp.lt.s32.totalorder %s425_s29, %s421_s28 }
  0x25   :  { %v302_v59 = vld [vmem:[#allocation8] sm:$0x1]  ;;  %p428_p13 = por %p427_p12, %p426_p11 }
  0x26   :  { %79 = vmax.xlane.f32.xlu0 %v78_v7  ;;  %115 = vmax.xlane.f32.xlu1 %v114_v14 }
  0x27   :  { %p429_p0 = pnand %p428_p13, %p422_p10 }
  0x2a   :  { %278 = vmax.xlane.f32.xlu0 %v277_v15 }
  0xab   :  { %v66_v18 = vpop.xlane.xlu0 %65  ;;  %v95_v19 = vpop.xlane.xlu1 %94 }
  0xac   :  { %v67_v20 = vsub.f32 %v64_v5, %v66_v18  ;;  %v96_v21 = vsub.f32 %v93_v6, %v95_v19 }
  0xae   :  { %v68_v22 = vmul.f32 1.442695, %v67_v20  ;;  %v97_v23 = vmul.f32 1.442695, %v96_v21 }
  0xaf   :  { %v80_v24 = vpop.xlane.xlu0 %79  ;;  %v116_v30 = vpop.xlane.xlu1 %115 }
  0xb0   :  { %361 = vpow2.f32 %v68_v22  ;;  %v81_v25 = vsub.f32 %v78_v7, %v80_v24  ;;  %v117_v32 = vsub.f32 %v114_v14, %v116_v30 }
  0xb1   :  { %363 = vpow2.f32 %v97_v23 }
  0xb2   :  { %v82_v26 = vmul.f32 1.442695, %v81_v25  ;;  %v118_v34 = vmul.f32 1.442695, %v117_v32 }
  0xb3   :  { %v279_v31 = vpop.xlane.xlu0 %278 }
  0xb4   :  { %365 = vpow2.f32 %v82_v26  ;;  %v280_v33 = vsub.f32 %v277_v15, %v279_v31 }
  0xb5   :  { %367 = vpow2.f32 %v118_v34 }
  0xb6   :  { %v281_v35 = vmul.f32 1.442695, %v280_v33 }
  0xb8   :  { %369 = vpow2.f32 %v281_v35 }
  0xbd   :  { %v362_v27 = vpop.eup %361 }
  0xbe   :  { %70 = vadd.xlane.f32.xlu1 %v362_v27  ;;  %v364_v28 = vpop.eup %363 }
  0xc1   :  { %v366_v29 = vpop.eup %365 }
  0xc2   :  { %84 = vadd.xlane.f32.xlu0 %v366_v29  ;;  %99 = vadd.xlane.f32.xlu1 %v364_v28  ;;  %v368_v36 = vpop.eup %367 }
  0xc5   :  { %v370_v37 = vpop.eup %369 }
  0xc6   :  { %120 = vadd.xlane.f32.xlu0 %v368_v36  ;;  %283 = vadd.xlane.f32.xlu1 %v370_v37 }
  0xe3   :  { %v202_v56 = vpop.f32.mrf.mxu0  ;;  %v272_v57 = vpop.f32.mrf.mxu1 }
  0xe4   :  { %v273_v58 = vadd.f32 %v272_v57, %v202_v56 }
  0xe5   :  { %v346_v60 = vpop.f32.mrf.mxu0  ;;  %v351_v61 = vpop.f32.mrf.mxu1 }
  0xe6   :  { %v303_v62 = vadd.f32 %v302_v59, %v273_v58 }
  0xe8   :  { %304 = vst [vmem:[#allocation8] sm:$0x1] %v303_v62 }
 0x147   :  { %v71_v38 = vpop.xlane.xlu1 %70 }
 0x148   :  { %371 = vlog2.f32 %v71_v38 }
 0x14b   :  { %v85_v39 = vpop.xlane.xlu0 %84  ;;  %v100_v40 = vpop.xlane.xlu1 %99 }
 0x14c   :  { %373 = vlog2.f32 %v85_v39 }
 0x14d   :  { %375 = vlog2.f32 %v100_v40 }
 0x155   :  { %v372_v41 = vpop.eup %371 }
 0x156   :  { %v73_v42 = vmul.f32 0.6931472, %v372_v41 }
 0x158   :  { %v74_v47 = vsub.f32 %v67_v20, %v73_v42 }
 0x159   :  { %v374_v43 = vpop.eup %373 }
 0x15a   :  { %v376_v44 = vpop.eup %375  ;;  %v87_v45 = vmul.f32 0.6931472, %v374_v43 }
 0x15b   :  { %v102_v46 = vmul.f32 0.6931472, %v376_v44 }
 0x15c   :  { %v88_v48 = vsub.f32 %v81_v25, %v87_v45 }
 0x15d   :  { %v103_v49 = vsub.f32 %v96_v21, %v102_v46 }
 0x15e   :  { %v89_v50 = vadd.f32 %v88_v48, %v74_v47 }
 0x160   :  { %v104_v51 = vadd.f32 %v103_v49, %v89_v50 }
 0x162   :  { %v285_v52 = vsub.f32 %v104_v51, %v88_v48  ;;  %v122_v53 = vsub.f32 %v104_v51, %v74_v47 }
 0x164   :  { %v286_v54 = vmul.f32 %v370_v37, %v285_v52  ;;  %v123_v55 = vmul.f32 %v368_v36, %v122_v53 }
 0x166   :  { %287 = vadd.xlane.f32.xlu1 %v286_v54  ;;  %124 = vadd.xlane.f32.xlu0 %v123_v55 }
 0x167   :  { %432 = shalt.err (!%p429_p0)
}
 0x168   :  { %324 = dma.vmem_to_hbm [thread:$0]  %s322_s2, 16, %s530_s4, [#allocation9]   ;;  %v121_v63 = vpop.xlane.xlu0 %120  ;;  %v284_v0 = vpop.xlane.xlu1 %283  ;;  %v292_v14 = vld [vmem:[#allocation7] sm:$0x1] }
 0x169   :  { %377 = vrcp.f32 %v121_v63  ;;  %s477_s6 = smov [#allocation7]  }
 0x16a   :  { %379 = vrcp.f32 %v284_v0  ;;  %s311_s4 = sshll.u32 %s477_s6, 4  ;;  %s312_s4 = int_to_ptr.vmem [resolvable:$true] %s311_s4 }
 0x16b   :  { %s441_s7 = scalar_lea.vmem %s312_s4, 16  ;;  %s445_s8 = scalar_lea.vmem %s312_s4, 32 }
 0x16c   :  { %p442_p1 = scmp.ne.s32.totalorder %s312_s4, %s441_s7  ;;  %p446_p2 = scmp.lt.s32.totalorder %s312_s4, %s312_s4 }
 0x16d   :  { %p447_p3 = scmp.lt.s32.totalorder %s445_s8, %s441_s7 }
 0x16f   :  { %p448_p4 = por %p447_p3, %p446_p2 }
 0x171   :  { %p449_p5 = pnand %p448_p4, %p442_p1 }
 0x176   :  { %v378_v1 = vpop.eup %377 }
 0x177   :  { %v380_v2 = vpop.eup %379 }
 0x1ef   :  { %v125_v3 = vpop.xlane.xlu0 %124  ;;  %v288_v4 = vpop.xlane.xlu1 %287 }
 0x1f0   :  { %v127_v5 = vmul.f32 %v378_v1, %v125_v3  ;;  %v290_v7 = vmul.f32 %v380_v2, %v288_v4 }
 0x1f2   :  { %v128_v6 = vsub.f32 0.0, %v127_v5 }
 0x1f4   :  { %v291_v8 = vsub.f32 %v128_v6, %v290_v7 }
 0x1f6   :  { %v293_v9 = vrot.slane %v291_v8, 4 }
 0x1f8   :  { %v294_v10 = vadd.f32 %v293_v9, %v291_v8 }
 0x1fa   :  { %v295_v11 = vrot.slane %v294_v10, 2 }
 0x1fc   :  { %v296_v12 = vadd.f32 %v295_v11, %v294_v10 }
 0x1fe   :  { %v297_v13 = vrot.slane %v296_v12, 1 }
 0x200   :  { %v298_v15 = vadd.f32 %v297_v13, %v296_v12 }
 0x202   :  { %v299_v16 = vadd.f32 %v298_v15, %v292_v14 }
 0x204   :  { %301 = vst.msk [vmem:[#allocation7] sm:$0x1] %vm58_vm2, %v299_v16 }
 0x205   :  { %452 = shalt.err (!%p449_p5)
}
 0x206   :  { %314 = dma.vmem_to_hbm [thread:$0]  %s312_s4, 16, %s529_s3, [#allocation4]  }
 0x207   :  { %465 = dma.done.wait [#allocation4], 16  }
 0x208   :  { %466 = vsyncadd [#allocation4], 4294967280 }
 0x209   :  { %467 = dma.done.wait [#allocation9], 16  }
 0x20a   :  { %468 = vsyncadd [#allocation9], 4294967280 }
 0x20b   :  { %331 = vsyncpa [#allocation3], 1 }
 0x20c   :  { %332 = vsyncpa [#allocation6], 1 }
 0x20d   :  { %333 = vsyncpa [#allocation4], 1 }
 0x20e   :  { %334 = vsyncpa [#allocation9], 1 }

</bundles_post_ra>
